<compile_context>
chip_gen: v6e
topology: v6e:2x2x1
jax: 0.10.0
libtpu: 0.0.40
codegen_flags: <defaults>
</compile_context>

<pallas_src>
import jax
import jax.numpy as jnp
import numpy as np
from jax.experimental import pallas as pl
from jax.experimental.pallas import tpu as pltpu


def _round_up(x, m):
    return ((x + m - 1) // m) * m


def linear_kernel(x_ref, w_ref, b_ref, o_ref, acc_ref):
    """One (tm, tk) @ (tk, tn) MXU push per grid step with f32 accumulation in a
    VMEM scratch; bias is folded in f32 and the (tm, tn) tile is written as a
    single lane-dense slab on the last K step."""
    k = pl.program_id(2)

    @pl.when(k == 0)
    def _():
        acc_ref[...] = jnp.zeros_like(acc_ref)

    acc_ref[...] += jnp.dot(x_ref[...], w_ref[...],
                            preferred_element_type=jnp.float32)

    @pl.when(k == pl.num_programs(2) - 1)
    def _():
        o_ref[...] = (acc_ref[...] + b_ref[...]).astype(o_ref.dtype)


def simple_linear(x, w_t, b_row, *, block_m=512, block_n=512, block_k=512,
                  compute_dtype=jnp.bfloat16):
    """x: (T, B, nIn); w_t: (nIn, nOut) pre-transposed weight; b_row: (1, nOut)."""
    T, B, nIn = x.shape
    nOut = w_t.shape[1]
    M = T * B
    out_dtype = x.dtype

    # Flatten (T, B) -> rows, exactly like x.view(T*B, -1) in the module.
    x2 = x.reshape(M, nIn)

    # ---- N (nOut): pad weight/bias to a lane-dense multiple of 128 so output
    # stores are unmasked (nOut=16 would otherwise lower to masked vst.msk).
    nOut_p = _round_up(nOut, 128)
    if nOut_p != nOut:
        w_t = jnp.pad(w_t, ((0, 0), (0, nOut_p - nOut)))
        b_row = jnp.pad(b_row, ((0, 0), (0, nOut_p - nOut)))

    # ---- K (nIn): tiled reduction. Zero-pad only when nIn > block_k and not a
    # multiple of it (a ragged K tile would reduce over undefined lanes).
    tk = min(block_k, nIn)
    nIn_p = _round_up(nIn, tk)
    if nIn_p != nIn:
        x2 = jnp.pad(x2, ((0, 0), (0, nIn_p - nIn)))
        w_t = jnp.pad(w_t, ((0, nIn_p - nIn), (0, 0)))

    # ---- M (rows): no padding; Pallas masks the ragged last row tile. For
    # small M, split into >=2 tiles so both v7x TensorCores get work.
    if M >= 2 * block_m:
        tm = block_m
    elif M > 8:
        tm = min(_round_up(pl.cdiv(M, 2), 8), M)
    else:
        tm = M

    tn = min(block_n, nOut_p)
    grid = (pl.cdiv(M, tm), pl.cdiv(nOut_p, tn), pl.cdiv(nIn_p, tk))

    # bf16 operands are the native MXU dtype on v5e/v6e/v7x; accumulation and
    # the bias add stay in f32.
    x2 = x2.astype(compute_dtype)
    w_t = w_t.astype(compute_dtype)
    b_row = b_row.astype(jnp.float32)

    in_bytes = jnp.dtype(compute_dtype).itemsize
    out_bytes = jnp.dtype(out_dtype).itemsize
    # Double-buffered x/w/bias tiles + double-buffered output tile + f32 acc.
    needed = (2 * tm * tk * in_bytes + 2 * tk * tn * in_bytes + 2 * tn * 4
              + 2 * tm * tn * out_bytes + tm * tn * 4)
    vmem_limit = int(min(max(2 * needed + (4 << 20), 32 << 20), 64 << 20))

    cost = pl.CostEstimate(
        flops=2 * M * nIn_p * nOut_p,
        transcendentals=0,
        bytes_accessed=(M * nIn_p * in_bytes + nIn_p * nOut_p * in_bytes
                        + nOut_p * 4 + M * nOut_p * out_bytes),
    )

    out = pl.pallas_call(
        linear_kernel,
        out_shape=jax.ShapeDtypeStruct((M, nOut_p), out_dtype),
        grid_spec=pltpu.PrefetchScalarGridSpec(
            num_scalar_prefetch=0,
            grid=grid,
            in_specs=[
                pl.BlockSpec((tm, tk), lambda i, j, k: (i, k)),   # x row/K tile
                pl.BlockSpec((tk, tn), lambda i, j, k: (k, j)),   # weight panel
                pl.BlockSpec((1, tn), lambda i, j, k: (0, j)),    # bias row
            ],
            out_specs=pl.BlockSpec((tm, tn), lambda i, j, k: (i, j)),
            scratch_shapes=[pltpu.VMEM((tm, tn), jnp.float32)],
        ),
        compiler_params=pltpu.CompilerParams(
            dimension_semantics=("parallel", "parallel", "arbitrary"),
            vmem_limit_bytes=vmem_limit,
        ),
        cost_estimate=cost,
    )(x2, w_t, b_row)

    if nOut_p != nOut:
        out = out[:, :nOut]
    return out.reshape(T, B, nOut)


def init_params(key, nIn, nOut):
    """PyTorch nn.Linear default init: U(-1/sqrt(nIn), 1/sqrt(nIn)). The weight
    is stored pre-transposed (nIn, nOut) so the forward never pays a transpose."""
    k = 1.0 / np.sqrt(nIn)
    kw, kb = jax.random.split(key)
    w = jax.random.uniform(kw, (nOut, nIn), jnp.float32, -k, k)  # torch layout
    b = jax.random.uniform(kb, (nOut,), jnp.float32, -k, k)
    return {"w_t": w.T, "b": b}


def reference(x, params):
    T, B, nIn = x.shape
    y = x.reshape(T * B, nIn) @ params["w_t"] + params["b"]
    return y.reshape(T, B, -1)


if __name__ == "__main__":
    T, B, nIn, nOut = 8, 2, 32, 16
    key = jax.random.PRNGKey(0)
    kx, kp = jax.random.split(key)
    x = jax.random.normal(kx, (T, B, nIn), jnp.float32)
    params = init_params(kp, nIn, nOut)
    b_row = params["b"].reshape(1, nOut)

    out = jax.block_until_ready(simple_linear(x, params["w_t"], b_row))
    ref = jax.block_until_ready(reference(x, params))
    # bf16 operands with f32 accumulation -> slightly looser tolerance.
    np.testing.assert_allclose(np.asarray(out), np.asarray(ref),
                               rtol=2e-2, atol=2e-2)

    print("KERNEL_OK")
</pallas_src>

<mosaic_0001>
module attributes {stable_mosaic.version = 11 : i64} {
  func.func @linear_kernel(%arg0: i32, %arg1: i32, %arg2: i32, %arg3: memref<8x32xbf16, #tpu.memory_space<vmem>>, %arg4: memref<32x128xbf16, #tpu.memory_space<vmem>>, %arg5: memref<1x128xf32, #tpu.memory_space<vmem>>, %arg6: memref<8x128xf32, #tpu.memory_space<vmem>>, %arg7: memref<8x128xf32, #tpu.memory_space<vmem>>) attributes {dimension_semantics = [#tpu.dimension_semantics<parallel>, #tpu.dimension_semantics<parallel>, #tpu.dimension_semantics<arbitrary>], iteration_bounds = array<i64: 2, 1, 1>, scalar_prefetch = 0 : i64, scratch_operands = 1 : i64, tpu.core_type = #tpu.core_type<tc>, window_params = [{transform_indices = @transform_0, window_bounds = array<i64: 8, 32>}, {transform_indices = @transform_1, window_bounds = array<i64: 32, 128>}, {transform_indices = @transform_2, window_bounds = array<i64: 1, 128>}, {transform_indices = @transform_3, window_bounds = array<i64: 8, 128>}]} {
    %c0_i32 = arith.constant 0 : i32
    %0 = arith.cmpi eq, %arg2, %c0_i32 : i32
    %1 = arith.extui %0 : i1 to i32
    %c0_i32_0 = arith.constant 0 : i32
    %2 = arith.cmpi ne, %1, %c0_i32_0 : i32
    scf.if %2 {
      %cst_10 = arith.constant 0.000000e+00 : f32
      %12 = vector.broadcast %cst_10 : f32 to vector<8x128xf32>
      %c0_11 = arith.constant 0 : index
      %c0_12 = arith.constant 0 : index
      %13 = vector.load %arg7[%c0_11, %c0_12] : memref<8x128xf32, #tpu.memory_space<vmem>>, vector<8x128xf32>
      tpu.vector_store %arg7[%c0_11, %c0_12], %12 {strides = array<i32>} : memref<8x128xf32, #tpu.memory_space<vmem>>, vector<8x128xf32>,
    } else {
    }
    %c0 = arith.constant 0 : index
    %c0_1 = arith.constant 0 : index
    %3 = vector.load %arg7[%c0, %c0_1] : memref<8x128xf32, #tpu.memory_space<vmem>>, vector<8x128xf32>
    %c0_2 = arith.constant 0 : index
    %c0_3 = arith.constant 0 : index
    %4 = vector.load %arg3[%c0_2, %c0_3] : memref<8x32xbf16, #tpu.memory_space<vmem>>, vector<8x32xbf16>
    %c0_4 = arith.constant 0 : index
    %c0_5 = arith.constant 0 : index
    %5 = vector.load %arg4[%c0_4, %c0_5] : memref<32x128xbf16, #tpu.memory_space<vmem>>, vector<32x128xbf16>
    %cst = arith.constant dense<0.000000e+00> : vector<8x128xf32>
    %6 = tpu.matmul %4, %5, %cst {dimension_numbers = #tpu.dot_dimension_numbers<[1], [0], [0], [1], [0, 0, 1, 1], [], []>} : vector<8x32xbf16>, vector<32x128xbf16>, vector<8x128xf32> -> vector<8x128xf32>
    %7 = arith.addf %3, %6 : vector<8x128xf32>
    %c0_6 = arith.constant 0 : index
    %c0_7 = arith.constant 0 : index
    %8 = vector.load %arg7[%c0_6, %c0_7] : memref<8x128xf32, #tpu.memory_space<vmem>>, vector<8x128xf32>
    tpu.vector_store %arg7[%c0_6, %c0_7], %7 {strides = array<i32>} : memref<8x128xf32, #tpu.memory_space<vmem>>, vector<8x128xf32>,
    %c0_i32_8 = arith.constant 0 : i32
    %9 = arith.cmpi eq, %arg2, %c0_i32_8 : i32
    %10 = arith.extui %9 : i1 to i32
    %c0_i32_9 = arith.constant 0 : i32
    %11 = arith.cmpi ne, %10, %c0_i32_9 : i32
    scf.if %11 {
      %c0_10 = arith.constant 0 : index
      %c0_11 = arith.constant 0 : index
      %12 = vector.load %arg7[%c0_10, %c0_11] : memref<8x128xf32, #tpu.memory_space<vmem>>, vector<8x128xf32>
      %c0_12 = arith.constant 0 : index
      %c0_13 = arith.constant 0 : index
      %13 = vector.load %arg5[%c0_12, %c0_13] : memref<1x128xf32, #tpu.memory_space<vmem>>, vector<1x128xf32>
      %14 = vector.broadcast %13 : vector<1x128xf32> to vector<8x128xf32>
      %15 = arith.addf %12, %14 : vector<8x128xf32>
      %c0_14 = arith.constant 0 : index
      %c0_15 = arith.constant 0 : index
      %16 = vector.load %arg6[%c0_14, %c0_15] : memref<8x128xf32, #tpu.memory_space<vmem>>, vector<8x128xf32>
      tpu.vector_store %arg6[%c0_14, %c0_15], %15 {strides = array<i32>} : memref<8x128xf32, #tpu.memory_space<vmem>>, vector<8x128xf32>,
    } else {
    }
    return
  }
  func.func @transform_0(%arg0: i32, %arg1: i32, %arg2: i32) -> (i32, i32) {
    %c0_i32 = arith.constant 0 : i32
    return %arg0, %arg2 : i32, i32
  }
  func.func @transform_1(%arg0: i32, %arg1: i32, %arg2: i32) -> (i32, i32) {
    %c0_i32 = arith.constant 0 : i32
    return %arg2, %arg1 : i32, i32
  }
  func.func @transform_2(%arg0: i32, %arg1: i32, %arg2: i32) -> (i32, i32) {
    %c0_i32 = arith.constant 0 : i32
    %c0_i32_0 = arith.constant 0 : i32
    return %c0_i32, %arg1 : i32, i32
  }
  func.func @transform_3(%arg0: i32, %arg1: i32, %arg2: i32) -> (i32, i32) {
    %c0_i32 = arith.constant 0 : i32
    return %arg0, %arg1 : i32, i32
  }
}

</mosaic_0001>

<bundles_post_ra>
// kernel: tpu_custom_call.1
= control target key start
LH: loop header
LB: loop body
LE: loop exit
PB: predicated region body
PF: predicated region fallthrough
CT: control target
= control target key end

     0   :  { %8 = vsyncpa [#allocation4], 0  ;;  %s918_s0 = inlined_call_operand.hbm [shape: bf16[16,32], index: 0, kind: input, shape index: {}]   ;;  %s919_s1 = inlined_call_operand.hbm [shape: bf16[32,128], index: 1, kind: input, shape index: {}]   ;;  %s920_s2 = inlined_call_operand.vmem [shape: f32[1,128], index: 2, kind: input, shape index: {}]   ;;  %s921_s3 = inlined_call_operand.hbm [shape: f32[16,128], index: 3, kind: output, shape index: {}]  }
   0x1   :  { %10 = vsyncpa [#allocation4 + $0x1], 0 }
   0x2   :  { %11 = vsyncpa [#allocation7], 0 }
   0x3   :  { %12 = vsyncpa [#allocation5], 0 }
   0x4   :  { %14 = vsyncpa [#allocation5 + $0x1], 0  ;;  %s735_s12 = smov 0   ;;  %s737_s13 = smov 0  }
   0x5   :  { %s739_s14 = smov 0   ;;  %s741_s15 = smov 0  }
   0x6   :  { %s743_s16 = smov 0   ;;  %s745_s17 = smov 0  }
   0x7 LB: > { %s458_s18 = sadd.s32 4294967295, %s706_s17   ;;  %s459_s19 = sadd.s32 4294967294, %s706_s17   ;;  %s706_s17 = sphi %s745_s17, %s20_s17   ;;  %s702_s16 = sphi %s743_s16, %s939_s16   ;;  %s698_s15 = sphi %s741_s15, %s938_s15   ;;  %s694_s14 = sphi %s739_s14, %s937_s14   ;;  %s690_s13 = sphi %s737_s13, %s936_s13   ;;  %s686_s12 = sphi %s735_s12, %s935_s12  }
   0x8   : > { %p61_p0 = scmp.ne.s32.totalorder %s690_s13, %s686_s12  ;;  %p769_p1 = scmp.eq.s32.totalorder %s458_s18, 0 }
   0x9   : > { %p773_p2 = scmp.eq.s32.totalorder %s458_s18, 1  ;;  %p147_p3 = scmp.eq.s32.totalorder %s459_s19, 1 }
   0xa   : > { %p779_p4 = por %p769_p1, %p61_p0  ;;  %p460_p5 = scmp.ge.s32.totalorder %s706_s17, 1 }
   0xb   : > { %p784_p6 = por %p147_p3, %p61_p0  ;;  %p154_p7 = scmp.lt.s32.totalorder %s706_s17, 3 }
   0xc   : > { %s925_s22 = scalar_select %p779_p4, 1, 0 }
   0xd   : > { %s926_s23 = scalar_select %p784_p6, 1, 0 }
   0xe   : > { %p789_p8 = pnand %p460_p5, %p154_p7  ;;  %s708_s25 = smov [#allocation6]  }
   0xf   : > { %s170_s26 = sshll.u32 %s708_s25, 4  ;;  %s39_s28 = sadd.s32 1, %s702_s16  ;;  %s171_s26 = int_to_ptr.vmem [resolvable:$true] %s170_s26 }
  0x10   : > { %p497_p9 = pneg %p789_p8  ;;  %s579_s29 = scalar_lea.vmem %s171_s26, 256 }
  0x11   : > { %p580_p13 = scmp.ne.s32.totalorder %s171_s26, %s579_s29  ;;  %p587_p5 = scmp.lt.s32.totalorder %s171_s26, %s171_s26 }
  0x12   : > { %p798_p11 = pnand %p497_p9, %p769_p1  ;;  %p588_p7 = scmp.lt.s32.totalorder %s579_s29, %s579_s29 }
  0x14   : > { %p570_p12 = pneg %p798_p11  ;;  %p589_p6 = por %p588_p7, %p587_p5 }
  0x16   : > { %p582_p0 = pnand %p580_p13, %p570_p12 }
  0x18   : > { %p583_p3 = pneg %p582_p0 }
  0x1a   : > { %p590_p4 = pnand %p589_p6, %p583_p3 }
  0x1c   : > { %593 = shalt.err (!%p590_p4)
}
  0x1d   : > { %s709_s30 = smov 64   ;;  %s710_s4 = smov 4  }
  0x1e   : > { %500 = dma.hbm_to_vmem [thread:$0]  (!%p798_p11), %s919_s1, 256, %s171_s26, [#allocation7], %s709_s30, %s709_s30, %s710_s4  }
  0x1f   : > { %p41_p6 = scmp.ge.s32.totalorder %s39_s28, 2  ;;  %s48_s7 = sadd.s32 1, %s694_s14 }
  0x20   : > { %p55_p4 = scmp.ne.s32.totalorder %s694_s14, %s690_s13  ;;  %p56_p9 = scmp.eq.s32.totalorder %s706_s17, 0 }
  0x21   : > { %s941_s28 = smov (%p41_p6, %s39_s28), 0  ;;  %p510_p0 = scmp.lt.s32.totalorder %s706_s17, 2 }
  0x22   : > { %p816_p12 = por %p56_p9, %p55_p4  ;;  %p822_p13 = por %p773_p2, %p55_p4 }
  0x23   : > { %s43_s10 = ssub.s32 %s702_s16, %s941_s28  ;;  %s190_s11 = sand.u32 1, %s694_s14  }
  0x24   : > { %p46_p11 = scmp.eq.s32.totalorder %s43_s10, 0  ;;  %s464_s18 = sshll.u32 %s190_s11, 2 }
  0x25   : > { %s465_s25 = sshll.u32 %s702_s16, 6  ;;  %s194_s30 = scalar_lea.vmem [#allocation3], %s464_s18 }
  0x26   : > { %s831_s19 = scalar_select %p46_p11, %s694_s14, %s48_s7  }
  0x27   : > { %s200_s29 = scalar_lea.hbm %s918_s0, %s465_s25  ;;  %s202_s4 = sshll.u32 %s194_s30, 4  ;;  %s203_s4 = int_to_ptr.vmem [resolvable:$true] %s202_s4 }
  0x28   : > { %p839_p2 = pnand %p510_p0, %p816_p12  ;;  %s191_s5 = scalar_lea.sflag [#allocation4], %s190_s11 }
  0x29   : > { %s607_s6 = scalar_lea.vmem %s203_s4, 64  ;;  %s711_s7 = smov [#allocation3]  }
  0x2a   : > { %p596_p3 = pneg %p839_p2  ;;  %p608_p5 = scmp.ne.s32.totalorder %s203_s4, %s607_s6 }
  0x2b   : > { %s612_s10 = sshll.u32 %s711_s7, 4  ;;  %s613_s10 = int_to_ptr.vmem [resolvable:$false] %s612_s10 }
  0x2c   : > { %p610_p7 = pnand %p608_p5, %p596_p3  ;;  %s614_s25 = scalar_lea.vmem %s613_s10, 128 }
  0x2d   : > { %p615_p4 = scmp.lt.s32.totalorder %s203_s4, %s613_s10  ;;  %p616_p9 = scmp.lt.s32.totalorder %s614_s25, %s607_s6 }
  0x2e   : > { %p611_p6 = pneg %p610_p7 }
  0x2f   : > { %p617_p11 = por %p616_p9, %p615_p4 }
  0x31   : > { %p618_p10 = pnand %p617_p11, %p611_p6 }
  0x33   : > { %621 = shalt.err (!%p618_p10)
}
  0x34   : > { %504 = dma.hbm_to_vmem [thread:$0]  (!%p839_p2), %s200_s29, 64, %s203_s4, %s191_s5  }
  0x35   : > { %211 = sbr.rel (%p789_p8) target bundleno = 279 (0x117), region = 32  ;;  %s850_s8 = sand.u32 (!%p789_p8), 1, %s690_s13  }
  0x36   : > { %s467_s11 = sshll.u32 (!%p789_p8), %s850_s8, 2  ;;  %s214_s18 = scalar_lea.sflag (!%p789_p8), [#allocation4], %s850_s8 }
  0x37   : > { %s217_s26 = scalar_lea.vmem (!%p789_p8), [#allocation3], %s467_s11  ;;  %p932_p12 = scmp.ne.s32.totalorder (!%p789_p8), %s925_s22, 0 }
  0x3a   : > { %673 = dma.done.wait (%p932_p12), %s214_s18, 64  }
  0x3b   : > { %675 = vsyncadd (%p932_p12), %s214_s18, 4294967232 }
  0x3c   : > { %677 = dma.done.wait (%p769_p1), [#allocation7], 256  }
  0x3d   : > { %679 = vsyncadd (%p769_p1), [#allocation7], 4294967040  ;;  %v712_v0 = vmov 0.0   ;;  %vm713_vm0 = vmmov 0   ;;  %v566_v1 = vld [vmem:[#allocation6 + $0x8] sm:$0xff]   ;;  %v567_v2 = vld [vmem:[#allocation6] sm:$0xff]  }
  0x3e   : > { %481 = vmatprep.subr.bf16.mxu0 %v712_v0  ;;  %485 = vmatprep.mubr.msk.bf16.mxu0 %vm713_vm0, %v712_v0  ;;  %v258_v3 = vld [vmem:[%s217_s26] sm:$0xf]  ;;  %vm275_vm1 = vcmask 261120   ;;  %s469_s22 = sshll.u32 %s850_s8, 3  ;;  %s475_s27 = sshll.u32 %s698_s15, 7 }
  0x3f   : > { %482 = vmatpush3.bf16.msra.mxu0 %v566_v1  ;;  %v473_v4 = vld [vmem:[%s920_s2] ss:$0 sm:$0xff]  ;;  %s246_s29 = scalar_lea.vmem [#allocation8], %s469_s22  ;;  %s870_s5 = scalar_lea.hbm %s921_s3, %s475_s27 }
  0x40   : > { %483 = vmatprep.subr.bf16.mxu0 %v712_v0  ;;  %s349_s30 = sshll.u32 %s246_s29, 4  ;;  %s335_s6 = scalar_lea.sflag [#allocation5], %s850_s8  ;;  %s872_s30 = int_to_ptr.vmem [resolvable:$true] %s349_s30 }
  0x41   : > { %s622_s7 = scalar_lea.vmem %s872_s30, 128  ;;  %s714_s15 = smov [#allocation8]  }
  0x42   : > { %p623_p1 = scmp.ne.s32.totalorder %s872_s30, %s622_s7  ;;  %s626_s10 = sshll.u32 %s714_s15, 4  ;;  %s627_s10 = int_to_ptr.vmem [resolvable:$false] %s626_s10 }
  0x43   : > { %484 = vmatpush3.bf16.msra.mxu0 %v567_v2  ;;  %s628_s25 = scalar_lea.vmem %s627_s10, 256  ;;  %p629_p0 = scmp.lt.s32.totalorder %s872_s30, %s627_s10 }
  0x44   : > { %p624_p8 = pnand %p623_p1, %p822_p13  ;;  %p630_p2 = scmp.lt.s32.totalorder %s628_s25, %s622_s7 }
  0x46   : > { %486 = vmatmul.mubr.msk.bf16.vlgmr.msra.gmra.mxu0 %vm275_vm1, %v258_v3  ;;  %p625_p10 = pneg %p624_p8  ;;  %p631_p3 = por %p630_p2, %p629_p0 }
  0x48   : > { %p632_p5 = pnand %p631_p3, %p625_p10 }
 0x106   : > { %v313_v5 = vpop.f32.mrf.mxu0 }
 0x107   : > { %v332_v6 = vadd.f32 %v473_v4, %v313_v5 }
 0x108   : > { %v487_v7 = vpop.f32.mrf.mxu0 }
 0x109   : > { %333 = vst [vmem:[%s246_s29] sm:$0xff] %v332_v6 }
 0x10a   : > { %v316_v8 = vpop.f32.mrf.mxu0 }
 0x10b   : > { %635 = shalt.err (!%p632_p5)
}
 0x10c   : > { %s636_s11 = scalar_lea.hbm %s870_s5, 128  ;;  %s640_s26 = scalar_lea.hbm %s921_s3, 256 }
 0x10d   : > { %p637_p7 = scmp.ne.s32.totalorder %s870_s5, %s636_s11  ;;  %p641_p9 = scmp.lt.s32.totalorder %s870_s5, %s921_s3 }
 0x10e   : > { %p642_p11 = scmp.lt.s32.totalorder %s640_s26, %s636_s11 }
 0x10f   : > { %p638_p6 = pnand %p637_p7, %p822_p13 }
 0x110   : > { %p643_p12 = por %p642_p11, %p641_p9 }
 0x111   : > { %p639_p4 = pneg %p638_p6 }
 0x113   : > { %p644_p1 = pnand %p643_p12, %p639_p4 }
 0x115   : > { %647 = shalt.err (!%p644_p1)
}
 0x116   : > { %495 = dma.vmem_to_hbm [thread:$0]  (%p822_p13), %s872_s30, 128, %s870_s5, %s335_s6   ;;  %v488_v9 = vpop.f32.mrf.mxu0 }
 0x117 PF: > { %s361_s20 = sand.u32 1, %s686_s12   ;;  %p933_p8 = scmp.ne.s32.totalorder %s926_s23, 0 }
 0x118   : > { %p934_p10 = scmp.ge.s32.totalorder %s706_s17, 2  ;;  %s362_s27 = scalar_lea.sflag [#allocation5], %s361_s20 }
 0x11a   : > { %p506_p0 = pnand %p934_p10, %p933_p8 }
 0x11c   : > { %p507_p2 = pneg %p506_p0 }
 0x11e   : > { %681 = dma.done.wait (%p507_p2), %s362_s27, 128  }
 0x11f   : > { %683 = vsyncadd (%p507_p2), %s362_s27, 4294967168  ;;  %s20_s17 = sadd.s32 1, %s706_s17   ;;  %s935_s12 = smov %s690_s13 }
 0x120   : > { %p17_p3 = scmp.ge.s32.totalorder %s20_s17, 4   ;;  %s936_s13 = smov %s694_s14 }
 0x121   : > { %s937_s14 = smov %s831_s19  ;;  %s938_s15 = smov %s702_s16 }
 0x122   : > { %s939_s16 = smov %s941_s28  ;;  %19 = sbr.rel (!%p17_p3) target bundleno = 7 (0x7), region = 93 }
 0x127   :  { %367 = vsyncpa [#allocation4], 1 }
 0x128   :  { %369 = vsyncpa [#allocation4 + $0x1], 1 }
 0x129   :  { %370 = vsyncpa [#allocation7], 1 }
 0x12a   :  { %371 = vsyncpa [#allocation5], 1 }
 0x12b   :  { %373 = vsyncpa [#allocation5 + $0x1], 1 }

</bundles_post_ra>
